<compile_context>
chip_gen: v6e
topology: v6e:2x2x1
jax: 0.10.0
libtpu: 0.0.40
codegen_flags: <defaults>
</compile_context>

<pallas_src>
import jax
import jax.numpy as jnp
from jax.experimental import pallas as pl
from jax.experimental.pallas import tpu as pltpu


def _copy_kernel(x_ref, o_ref):
    # x_ref / o_ref: (tm, L) lane-dense VMEM tiles -> full unmasked vld/vst.
    o_ref[...] = x_ref[...]


def _sublane_pack(dtype) -> int:
    # Sublane packing of one vreg: 8 rows for 4-byte, 16 for 2-byte, 32 for
    # 1-byte dtypes.
    itemsize = jnp.dtype(dtype).itemsize
    return max(8, 32 // max(1, itemsize))


def _choose_view_and_tile(total_elems, dtype, target_bytes=2 << 20):
    """Pick a lane-dense 2-D view (rows, L) of the flat copy plus a row tile.

    Any factorization of a contiguous copy is valid, so the view is decoupled
    from the logical (C, H, W) geometry: L is a large multiple of 128 that
    divides the element count (unmasked full-lane stores) and the row tile is
    ~target_bytes, a multiple of the dtype's sublane pack, and (when feasible)
    an even divisor of `rows` so no grid step needs masked tail stores.
    Returns None if no 128-lane-dense view exists (caller uses the reshape
    fast path instead).
    """
    itemsize = jnp.dtype(dtype).itemsize
    pack = _sublane_pack(dtype)

    lane_w = None
    for cand in (4096, 2048, 1024, 512, 256, 128):
        if total_elems % cand == 0:
            lane_w = cand
            break
    if lane_w is None:
        return None

    rows = total_elems // lane_w

    # ~target_bytes per tile, rounded down to the sublane pack.
    tm = max(pack, (target_bytes // (lane_w * itemsize)) // pack * pack)
    if rows <= pack or tm >= rows:
        # Tiny input: one full-array tile (block == array, (8,128) rule waived).
        return rows, lane_w, rows

    # Prefer a tile that divides rows evenly (no masked tail store).
    t = tm
    while t >= pack:
        if rows % t == 0:
            return rows, lane_w, t
        t -= pack
    return rows, lane_w, tm


def test_time_collate(images, labels, *, use_copy_kernel=True):
    """Pallas equivalent of TestTimeCollate.forward.

    images: (B, N, C, H, W) array -- the B per-sample (N, C, H, W) view stacks
            of the torch batch laid out contiguously (what torch.cat consumes).
    labels: (B,) int array.
    Returns (concat_images (B*N, C, H, W), labels (B,)).
    """
    B, N, C, H, W = images.shape
    rows_out = B * N

    if not use_copy_kernel:
        # Perf review #1: torch.cat of contiguous same-shaped stacks is exactly
        # a metadata-only reshape -- no HBM traffic, no kernel launch.
        return images.reshape(rows_out, C, H, W), labels

    total = int(images.size)
    view = _choose_view_and_tile(total, images.dtype)
    if view is None:
        # Element count not 128-lane dense: a copy kernel would only add
        # masked stores; use the metadata-only path.
        return images.reshape(rows_out, C, H, W), labels

    rows, lane_w, tm = view
    itemsize = jnp.dtype(images.dtype).itemsize
    flat = images.reshape(rows, lane_w)  # zero-cost metadata reshape

    out_flat = pl.pallas_call(
        _copy_kernel,
        out_shape=jax.ShapeDtypeStruct((rows, lane_w), images.dtype),
        grid_spec=pltpu.PrefetchScalarGridSpec(
            num_scalar_prefetch=0,
            grid=(pl.cdiv(rows, tm),),
            in_specs=[pl.BlockSpec((tm, lane_w), lambda i: (i, 0))],
            out_specs=pl.BlockSpec((tm, lane_w), lambda i: (i, 0)),
        ),
        compiler_params=pltpu.CompilerParams(
            dimension_semantics=("parallel",),
            # 2x in + 2x out buffers of <= ~2 MiB tiles = <= ~8 MiB; explicit
            # limit keeps us independent of each generation's scoped default
            # (16 MiB v5e / 32 MiB v6e, v7x) while staying far below physical.
            vmem_limit_bytes=32 << 20,
        ),
        # Pure-bandwidth custom call: tell XLA so it can schedule/overlap it.
        cost_estimate=pl.CostEstimate(
            flops=0,
            transcendentals=0,
            bytes_accessed=2 * total * itemsize,
        ),
    )(flat)

    return out_flat.reshape(rows_out, C, H, W), labels


if __name__ == "__main__":
    key = jax.random.PRNGKey(0)
    B, N, C, H, W = 2, 3, 4, 16, 16  # 2 samples, 3 test-time views each

    k_img, k_lab = jax.random.split(key)
    # Emulate the list-of-tuples batch: per-sample image stacks + int labels.
    images = jax.random.normal(k_img, (B, N, C, H, W), dtype=jnp.float32)
    labels = jax.random.randint(k_lab, (B,), 0, 10, dtype=jnp.int32)

    # Pallas copy-kernel path.
    out_images, out_labels = test_time_collate(images, labels, use_copy_kernel=True)
    jax.block_until_ready((out_images, out_labels))

    # Recommended fast path (metadata-only reshape, no kernel launch).
    fast_images, fast_labels = test_time_collate(images, labels, use_copy_kernel=False)
    jax.block_until_ready((fast_images, fast_labels))

    # Reference: torch.cat(list_of_images) == reshape to (B*N, C, H, W).
    ref_images = images.reshape(B * N, C, H, W)
    assert out_images.shape == (B * N, C, H, W)
    assert out_labels.shape == (B,)
    assert jnp.array_equal(out_images, ref_images)
    assert jnp.array_equal(fast_images, ref_images)
    assert jnp.array_equal(out_labels, labels)
    assert jnp.array_equal(fast_labels, labels)

    print("KERNEL_OK")
</pallas_src>

<mosaic_0001>
module attributes {stable_mosaic.version = 11 : i64} {
  func.func @_copy_kernel(%arg0: i32, %arg1: memref<3x2048xf32, #tpu.memory_space<vmem>>, %arg2: memref<3x2048xf32, #tpu.memory_space<vmem>>) attributes {dimension_semantics = [#tpu.dimension_semantics<parallel>], iteration_bounds = array<i64: 1>, scalar_prefetch = 0 : i64, scratch_operands = 0 : i64, tpu.core_type = #tpu.core_type<tc>, window_params = [{transform_indices = @transform_0, window_bounds = array<i64: 3, 2048>}, {transform_indices = @transform_1, window_bounds = array<i64: 3, 2048>}]} {
    %c0 = arith.constant 0 : index
    %c0_0 = arith.constant 0 : index
    %0 = vector.load %arg1[%c0, %c0_0] : memref<3x2048xf32, #tpu.memory_space<vmem>>, vector<3x2048xf32>
    %c0_1 = arith.constant 0 : index
    %c0_2 = arith.constant 0 : index
    %1 = vector.load %arg2[%c0_1, %c0_2] : memref<3x2048xf32, #tpu.memory_space<vmem>>, vector<3x2048xf32>
    tpu.vector_store %arg2[%c0_1, %c0_2], %0 {strides = array<i32>} : memref<3x2048xf32, #tpu.memory_space<vmem>>, vector<3x2048xf32>,
    return
  }
  func.func @transform_0(%arg0: i32) -> (i32, i32) {
    %c0_i32 = arith.constant 0 : i32
    %c0_i32_0 = arith.constant 0 : i32
    return %arg0, %c0_i32 : i32, i32
  }
  func.func @transform_1(%arg0: i32) -> (i32, i32) {
    %c0_i32 = arith.constant 0 : i32
    %c0_i32_0 = arith.constant 0 : i32
    return %arg0, %c0_i32 : i32, i32
  }
}

</mosaic_0001>

<bundles_post_ra>
// kernel: tpu_custom_call.1
= control target key start
LH: loop header
LB: loop body
LE: loop exit
PB: predicated region body
PF: predicated region fallthrough
CT: control target
= control target key end

     0   :  { %6 = vsyncpa [#allocation3], 0  ;;  %s116_s0 = inlined_call_operand.hbm [shape: f32[3,2048], index: 0, kind: input, shape index: {}]   ;;  %s117_s1 = inlined_call_operand.hbm [shape: f32[3,2048], index: 1, kind: output, shape index: {}]  }
   0x1   :  { %7 = vsyncpa [#allocation4], 0  ;;  %s98_s6 = smov [#allocation2]  }
   0x2   :  { %s14_s7 = sshll.u32 %s98_s6, 4  ;;  %s15_s7 = int_to_ptr.vmem [resolvable:$true] %s14_s7 }
   0x3   :  { %s62_s8 = scalar_lea.vmem %s15_s7, 1024  ;;  %p67_p1 = scmp.lt.s32.totalorder %s15_s7, %s15_s7 }
   0x4   :  { %p63_p0 = scmp.ne.s32.totalorder %s15_s7, %s62_s8  ;;  %p68_p2 = scmp.lt.s32.totalorder %s62_s8, %s62_s8 }
   0x6   :  { %p69_p3 = por %p68_p2, %p67_p1 }
   0x8   :  { %p70_p4 = pnand %p69_p3, %p63_p0 }
   0xa   :  { %73 = shalt.err (!%p70_p4)
}
   0xb   :  { %17 = dma.hbm_to_vmem [thread:$0]  %s116_s0, 1024, %s15_s7, [#allocation3]  }
   0xc   :  { %94 = dma.done.wait [#allocation3], 1024  }
   0xd   :  { %95 = vsyncadd [#allocation3], 4294966272  ;;  %s99_s11 = smov [#allocation5]   ;;  %v21_v0 = vld [vmem:[#allocation2] sm:$0x77] }
   0xe   :  { %s43_s12 = sshll.u32 %s99_s11, 4  ;;  %v22_v1 = vld [vmem:[#allocation2 + $0x8] sm:$0x77]  ;;  %v23_v2 = vld [vmem:[#allocation2 + $0x10] sm:$0x77]  ;;  %s44_s12 = int_to_ptr.vmem [resolvable:$true] %s43_s12 }
   0xf   :  { %29 = vst [vmem:[#allocation5] sm:$0x77] %v21_v0  ;;  %30 = vst [vmem:[#allocation5 + $0x8] sm:$0x77] %v22_v1  ;;  %v24_v3 = vld [vmem:[#allocation2 + $0x18] sm:$0x77]  ;;  %p79_p6 = scmp.lt.s32.totalorder %s44_s12, %s44_s12 }
  0x10   :  { %31 = vst [vmem:[#allocation5 + $0x10] sm:$0x77] %v23_v2  ;;  %v25_v4 = vld [vmem:[#allocation2 + $0x20] sm:$0x77]  ;;  %v26_v5 = vld [vmem:[#allocation2 + $0x28] sm:$0x77] }
  0x11   :  { %32 = vst [vmem:[#allocation5 + $0x18] sm:$0x77] %v24_v3  ;;  %33 = vst [vmem:[#allocation5 + $0x20] sm:$0x77] %v25_v4  ;;  %v27_v6 = vld [vmem:[#allocation2 + $0x30] sm:$0x77] }
  0x12   :  { %34 = vst [vmem:[#allocation5 + $0x28] sm:$0x77] %v26_v5  ;;  %v28_v7 = vld [vmem:[#allocation2 + $0x38] sm:$0x77]  ;;  %35 = vst [vmem:[#allocation5 + $0x30] sm:$0x77] %v27_v6 }
  0x13   :  { %36 = vst [vmem:[#allocation5 + $0x38] sm:$0x77] %v28_v7  ;;  %s74_s0 = scalar_lea.vmem %s44_s12, 1024 }
  0x14   :  { %p75_p5 = scmp.ne.s32.totalorder %s44_s12, %s74_s0  ;;  %p80_p7 = scmp.lt.s32.totalorder %s74_s0, %s74_s0 }
  0x16   :  { %p81_p8 = por %p80_p7, %p79_p6 }
  0x18   :  { %p82_p9 = pnand %p81_p8, %p75_p5 }
  0x1a   :  { %85 = shalt.err (!%p82_p9)
}
  0x1b   :  { %46 = dma.vmem_to_hbm [thread:$0]  %s44_s12, 1024, %s117_s1, [#allocation4]  }
  0x1c   :  { %96 = dma.done.wait [#allocation4], 1024  }
  0x1d   :  { %97 = vsyncadd [#allocation4], 4294966272 }
  0x1e   :  { %50 = vsyncpa [#allocation3], 1 }
  0x1f   :  { %51 = vsyncpa [#allocation4], 1 }

</bundles_post_ra>
